<compile_context>
chip_gen: v5e
topology: v5e:2x2
jax: 0.10.0
libtpu: 0.0.40
codegen_flags: <defaults>
</compile_context>

<pallas_src>
import functools

import jax
import jax.numpy as jnp
from jax import lax
from jax.experimental import pallas as pl
from jax.experimental.pallas import tpu as pltpu


def _upsample_conv_kernel(x_ref, a_ref, b_ref, bias_ref, o_ref):
    # x_ref:    (nb, H0, Cin*W0)   nb images, channels folded into lanes
    # a_ref:    (K*H, H0)          vertical taps + row upsample/reflect gather
    # b_ref:    (K*Cin*W0, tcw)    horizontal taps + col upsample/reflect + channel mix
    # bias_ref: (1, tcw)
    # o_ref:    (nb, H, tcw)       lane-dense output block
    nb, _, cin_w0 = x_ref.shape
    gw0, tcw = b_ref.shape
    k = gw0 // cin_w0
    h = a_ref.shape[0] // k

    a = a_ref[...]
    rows = []
    for n in range(nb):                                   # static unroll, nb small
        # Stage 1: one gather-dot covers all Cin channels and all K vertical taps.
        p = jnp.dot(a, x_ref[n], preferred_element_type=jnp.float32)   # (K*H, Cin*W0)
        # Reorder (k, y) rows -> y rows with k folded into lanes: sublane-aligned
        # row slices (H % 8 == 0) + lane concat (XLU slot), no extra MXU work.
        rows.append(jnp.concatenate(
            [p[i * h:(i + 1) * h, :] for i in range(k)], axis=1))      # (H, K*Cin*W0)
    lhs = rows[0] if nb == 1 else jnp.concatenate(rows, axis=0)        # (nb*H, K*Cin*W0)

    # Stage 2: single MXU dot, contraction = K*Cin*W0, covering all nb images.
    out = jnp.dot(lhs, b_ref[...], preferred_element_type=jnp.float32)  # (nb*H, tcw)
    out = out + bias_ref[...]
    o_ref[...] = out.reshape(nb, h, tcw).astype(o_ref.dtype)


def _round_up(x, m):
    return ((x + m - 1) // m) * m


def _pick_images_per_step(n, h):
    """Smallest divisor nb of n with nb*h >= 128 (fills MXU rows); capped at 32.

    If no divisor reaches the target (tiny N), deliberately collapse to the
    largest divisor (<= 32): one big step with exposed DMA beats several
    overhead-dominated micro-steps at this scale.
    """
    target = max(1, -(-128 // h))
    divisors = [d for d in range(1, n + 1) if n % d == 0]
    for d in divisors:
        if target <= d <= 32:
            return d
    return max(d for d in divisors if d <= 32)


def upsample_layer_forward(x_nchw, weight_oikk, bias, *, kernel_size, stride,
                           out_nchw=True):
    """Forward pass of UpsampleLayer.

    x_nchw:      (N, Cin, H0, W0)    float32
    weight_oikk: (Cout, Cin, K, K)   float32 (PyTorch Conv2d layout)
    bias:        (Cout,)             float32
    """
    N, Cin, H0, W0 = x_nchw.shape
    Cout = weight_oikk.shape[0]
    K, s = kernel_size, stride
    pad = K // 2
    H, W = s * H0, s * W0                     # output spatial dims
    G = K * Cin
    CW = Cout * W
    f32 = jnp.float32

    # Layout / validity preconditions the kernel design relies on.
    assert K % 2 == 1, "odd kernel_size assumed (PyTorch 'same' reflect pad)"
    assert s >= 1
    assert pad < s * H0 and pad < s * W0, "reflect pad must be < upsampled size"
    assert H0 % 8 == 0, "H0 must be a multiple of 8 (sublane-aligned row blocks)"

    w = weight_oikk.astype(f32)

    # Map: padded-upsampled index p -> source index in the original tensor
    # (reflect on the upsampled grid, then nearest i.e. floor-divide by stride).
    def src_map(orig_len):
        up = s * orig_len
        p = jnp.arange(up + 2 * pad)
        u = p - pad
        u = jnp.where(u < 0, -u, u)
        u = jnp.where(u >= up, 2 * up - 2 - u, u)
        return u // s

    rmap = src_map(H0)                                              # (H + 2*pad,)
    cmap = src_map(W0)                                              # (W + 2*pad,)

    # Stage-1 matrix: output row y, vertical tap i selects original row rmap[y+i].
    ridx = rmap[jnp.arange(K)[:, None] + jnp.arange(H)[None, :]]    # (K, H)
    A = jax.nn.one_hot(ridx, H0, dtype=f32).reshape(K * H, H0)      # (K*H, H0)

    # Stage-2 matrix: horizontal taps + column upsample/reflect + channel mix.
    # B[(i*Cin+ci)*W0 + x0, co*W + x] = sum_j w[co,ci,i,j] * [x0 == cmap[x+j]]
    cidx = cmap[jnp.arange(K)[:, None] + jnp.arange(W)[None, :]]    # (K, W)   [j, x]
    colsel = jax.nn.one_hot(cidx, W0, dtype=f32)                    # (K, W, W0)
    B = jnp.einsum('ocij,jxr->icrox', w, colsel).reshape(G * W0, CW)
    bias_row = jnp.repeat(bias.astype(f32), W).reshape(1, CW)       # column co*W + x

    # Pad output columns to a multiple of 128 -> every store is an unmasked vst.
    CWp = _round_up(CW, 128)
    if CWp != CW:
        B = jnp.pad(B, ((0, 0), (0, CWp - CW)))
        bias_row = jnp.pad(bias_row, ((0, 0), (0, CWp - CW)))

    # Output-column tile (multiple of 128, <= 512): bounds B's resident VMEM
    # footprint (v7x: 64 MiB physical / 32 MiB scoped default) and adds grid
    # steps for pipelining when Cout*W is large.
    tcw = CWp
    for cand in (512, 384, 256, 128):
        if CWp % cand == 0:
            tcw = cand
            break

    nb = _pick_images_per_step(N, H)

    # NCHW -> (N, H0, Cin*W0): cheap minor-dim-preserving transpose on the
    # *input* (stride^2 smaller than the output), lets stage 1 cover all
    # channels with one dot.
    x_rows = jnp.transpose(x_nchw, (0, 2, 1, 3)).reshape(N, H0, Cin * W0).astype(f32)

    grid = (N // nb, CWp // tcw)
    out = pl.pallas_call(
        _upsample_conv_kernel,
        out_shape=jax.ShapeDtypeStruct((N, H, CWp), f32),
        grid=grid,
        in_specs=[
            pl.BlockSpec((nb, H0, Cin * W0), lambda n, c: (n, 0, 0)),
            pl.BlockSpec((K * H, H0), lambda n, c: (0, 0)),
            pl.BlockSpec((G * W0, tcw), lambda n, c: (0, c)),
            pl.BlockSpec((1, tcw), lambda n, c: (0, c)),
        ],
        out_specs=pl.BlockSpec((nb, H, tcw), lambda n, c: (n, 0, c)),
        compiler_params=pltpu.CompilerParams(
            dimension_semantics=("parallel", "parallel")),
    )(x_rows, A, B, bias_row)

    out = out[:, :, :CW].reshape(N, H, Cout, W)
    if not out_nchw:
        return out          # (N, H, Cout, W): skips the extra HBM pass entirely
    # NCHW API contract: transpose keeps the minor (W) dim so it is a cheap
    # relayout; kept OUTSIDE the kernel to preserve lane-dense in-kernel stores.
    return jnp.transpose(out, (0, 2, 1, 3))


def _reference_forward(x_nchw, weight_oikk, bias, *, kernel_size, stride):
    """Pure-JAX reference (repeat + reflect pad + lax.conv) for correctness."""
    x = x_nchw
    if stride > 1:
        x = jnp.repeat(x, stride, axis=2)
        x = jnp.repeat(x, stride, axis=3)
    pad = kernel_size // 2
    if pad > 0:
        x = jnp.pad(x, ((0, 0), (0, 0), (pad, pad), (pad, pad)), mode="reflect")
    out = lax.conv_general_dilated(
        x, weight_oikk, window_strides=(1, 1), padding="VALID",
        dimension_numbers=("NCHW", "OIHW", "NCHW"))
    return out + bias.reshape(1, -1, 1, 1)


if __name__ == "__main__":
    # module hyperparameters
    in_channels, out_channels, kernel_size, stride = 4, 8, 3, 2

    key = jax.random.PRNGKey(0)
    kx, kw, kb = jax.random.split(key, 3)

    x = jax.random.normal(kx, (2, in_channels, 16, 16), dtype=jnp.float32)
    weight = jax.random.normal(
        kw, (out_channels, in_channels, kernel_size, kernel_size),
        dtype=jnp.float32) * 0.1
    bias = jax.random.normal(kb, (out_channels,), dtype=jnp.float32) * 0.1

    fwd = jax.jit(functools.partial(
        upsample_layer_forward, kernel_size=kernel_size, stride=stride))
    out = fwd(x, weight, bias)
    out = jax.block_until_ready(out)

    ref = _reference_forward(x, weight, bias,
                             kernel_size=kernel_size, stride=stride)
    assert out.shape == ref.shape, (out.shape, ref.shape)
    assert jnp.allclose(out, ref, atol=2e-4, rtol=2e-4), float(
        jnp.max(jnp.abs(out - ref)))

    print("KERNEL_OK")
</pallas_src>

<mosaic_0001>
module attributes {stable_mosaic.version = 11 : i64} {
  func.func @_upsample_conv_kernel(%arg0: i32, %arg1: i32, %arg2: memref<2x16x64xf32, #tpu.memory_space<vmem>>, %arg3: memref<96x16xf32, #tpu.memory_space<vmem>>, %arg4: memref<192x256xf32, #tpu.memory_space<vmem>>, %arg5: memref<1x256xf32, #tpu.memory_space<vmem>>, %arg6: memref<2x32x256xf32, #tpu.memory_space<vmem>>) attributes {dimension_semantics = [#tpu.dimension_semantics<parallel>, #tpu.dimension_semantics<parallel>], iteration_bounds = array<i64: 1, 1>, scalar_prefetch = 0 : i64, scratch_operands = 0 : i64, tpu.core_type = #tpu.core_type<tc>, window_params = [{transform_indices = @transform_0, window_bounds = array<i64: 2, 16, 64>}, {pipeline_mode = #tpu.pipeline_mode<synchronous>, transform_indices = @transform_1, window_bounds = array<i64: 96, 16>}, {transform_indices = @transform_2, window_bounds = array<i64: 192, 256>}, {transform_indices = @transform_3, window_bounds = array<i64: 1, 256>}, {transform_indices = @transform_4, window_bounds = array<i64: 2, 32, 256>}]} {
    %c0 = arith.constant 0 : index
    %c0_0 = arith.constant 0 : index
    %0 = vector.load %arg3[%c0, %c0_0] : memref<96x16xf32, #tpu.memory_space<vmem>>, vector<96x16xf32>
    %c0_1 = arith.constant 0 : index
    %c0_2 = arith.constant 0 : index
    %c0_3 = arith.constant 0 : index
    %1 = vector.load %arg2[%c0_1, %c0_2, %c0_3] : memref<2x16x64xf32, #tpu.memory_space<vmem>>, vector<1x16x64xf32>
    %2 = vector.shape_cast %1 : vector<1x16x64xf32> to vector<16x64xf32>
    %cst = arith.constant dense<0.000000e+00> : vector<96x64xf32>
    %3 = tpu.matmul %0, %2, %cst {dimension_numbers = #tpu.dot_dimension_numbers<[1], [0], [0], [1], [0, 0, 1, 1], [], []>} : vector<96x16xf32>, vector<16x64xf32>, vector<96x64xf32> -> vector<96x64xf32>
    %4 = vector.extract_strided_slice %3 {offsets = [0, 0], sizes = [32, 64], strides = [1, 1]} : vector<96x64xf32> to vector<32x64xf32>
    %5 = vector.extract_strided_slice %3 {offsets = [32, 0], sizes = [32, 64], strides = [1, 1]} : vector<96x64xf32> to vector<32x64xf32>
    %6 = vector.extract_strided_slice %3 {offsets = [64, 0], sizes = [32, 64], strides = [1, 1]} : vector<96x64xf32> to vector<32x64xf32>
    %7 = tpu.concatenate %4, %5, %6 in 1 : vector<32x64xf32>, vector<32x64xf32>, vector<32x64xf32> -> vector<32x192xf32>
    %c1 = arith.constant 1 : index
    %c0_4 = arith.constant 0 : index
    %c0_5 = arith.constant 0 : index
    %8 = vector.load %arg2[%c1, %c0_4, %c0_5] : memref<2x16x64xf32, #tpu.memory_space<vmem>>, vector<1x16x64xf32>
    %9 = vector.shape_cast %8 : vector<1x16x64xf32> to vector<16x64xf32>
    %cst_6 = arith.constant dense<0.000000e+00> : vector<96x64xf32>
    %10 = tpu.matmul %0, %9, %cst_6 {dimension_numbers = #tpu.dot_dimension_numbers<[1], [0], [0], [1], [0, 0, 1, 1], [], []>} : vector<96x16xf32>, vector<16x64xf32>, vector<96x64xf32> -> vector<96x64xf32>
    %11 = vector.extract_strided_slice %10 {offsets = [0, 0], sizes = [32, 64], strides = [1, 1]} : vector<96x64xf32> to vector<32x64xf32>
    %12 = vector.extract_strided_slice %10 {offsets = [32, 0], sizes = [32, 64], strides = [1, 1]} : vector<96x64xf32> to vector<32x64xf32>
    %13 = vector.extract_strided_slice %10 {offsets = [64, 0], sizes = [32, 64], strides = [1, 1]} : vector<96x64xf32> to vector<32x64xf32>
    %14 = tpu.concatenate %11, %12, %13 in 1 : vector<32x64xf32>, vector<32x64xf32>, vector<32x64xf32> -> vector<32x192xf32>
    %15 = tpu.concatenate %7, %14 in 0 : vector<32x192xf32>, vector<32x192xf32> -> vector<64x192xf32>
    %c0_7 = arith.constant 0 : index
    %c0_8 = arith.constant 0 : index
    %16 = vector.load %arg4[%c0_7, %c0_8] : memref<192x256xf32, #tpu.memory_space<vmem>>, vector<192x256xf32>
    %cst_9 = arith.constant dense<0.000000e+00> : vector<64x256xf32>
    %17 = tpu.matmul %15, %16, %cst_9 {dimension_numbers = #tpu.dot_dimension_numbers<[1], [0], [0], [1], [0, 0, 1, 1], [], []>} : vector<64x192xf32>, vector<192x256xf32>, vector<64x256xf32> -> vector<64x256xf32>
    %c0_10 = arith.constant 0 : index
    %c0_11 = arith.constant 0 : index
    %18 = vector.load %arg5[%c0_10, %c0_11] : memref<1x256xf32, #tpu.memory_space<vmem>>, vector<1x256xf32>
    %19 = vector.broadcast %18 : vector<1x256xf32> to vector<64x256xf32>
    %20 = arith.addf %17, %19 : vector<64x256xf32>
    %21 = vector.shape_cast %20 : vector<64x256xf32> to vector<2x32x256xf32>
    %c0_12 = arith.constant 0 : index
    %c0_13 = arith.constant 0 : index
    %c0_14 = arith.constant 0 : index
    %22 = vector.load %arg6[%c0_12, %c0_13, %c0_14] : memref<2x32x256xf32, #tpu.memory_space<vmem>>, vector<2x32x256xf32>
    tpu.vector_store %arg6[%c0_12, %c0_13, %c0_14], %21 {strides = array<i32>} : memref<2x32x256xf32, #tpu.memory_space<vmem>>, vector<2x32x256xf32>,
    return
  }
  func.func @transform_0(%arg0: i32, %arg1: i32) -> (i32, i32, i32) {
    %c0_i32 = arith.constant 0 : i32
    %c0_i32_0 = arith.constant 0 : i32
    %c0_i32_1 = arith.constant 0 : i32
    return %arg0, %c0_i32, %c0_i32_0 : i32, i32, i32
  }
  func.func @transform_1(%arg0: i32, %arg1: i32) -> (i32, i32) {
    %c0_i32 = arith.constant 0 : i32
    %c0_i32_0 = arith.constant 0 : i32
    %c0_i32_1 = arith.constant 0 : i32
    return %c0_i32, %c0_i32_0 : i32, i32
  }
  func.func @transform_2(%arg0: i32, %arg1: i32) -> (i32, i32) {
    %c0_i32 = arith.constant 0 : i32
    %c0_i32_0 = arith.constant 0 : i32
    return %c0_i32, %arg1 : i32, i32
  }
  func.func @transform_3(%arg0: i32, %arg1: i32) -> (i32, i32) {
    %c0_i32 = arith.constant 0 : i32
    %c0_i32_0 = arith.constant 0 : i32
    return %c0_i32, %arg1 : i32, i32
  }
  func.func @transform_4(%arg0: i32, %arg1: i32) -> (i32, i32, i32) {
    %c0_i32 = arith.constant 0 : i32
    %c0_i32_0 = arith.constant 0 : i32
    return %arg0, %c0_i32, %arg1 : i32, i32, i32
  }
}

</mosaic_0001>

<bundles_post_ra>
// kernel: upsample_layer_forward.1
= control target key start
LH: loop header
LB: loop body
LE: loop exit
PB: predicated region body
PF: predicated region fallthrough
CT: control target
= control target key end

     0   :  { %vm31_vm0 = vcmask 130048   ;;  %vm137_vm1 = vcmask 523264   ;;  %s916_s0 = inlined_call_operand.vmem [shape: f32[2,16,64], index: 0, kind: input, shape index: {}]   ;;  %s917_s1 = inlined_call_operand.vmem [shape: f32[96,16], index: 1, kind: input, shape index: {}]   ;;  %s918_s2 = inlined_call_operand.vmem [shape: f32[192,256], index: 2, kind: input, shape index: {}]   ;;  %s919_s3 = inlined_call_operand.vmem [shape: f32[1,256], index: 3, kind: input, shape index: {}]   ;;  %s920_s4 = inlined_call_operand.vmem [shape: f32[2,32,256], index: 4, kind: output, shape index: {}]  }
   0x1   :  { %v30_v0 = vld [vmem:[%s916_s0 + $0x8] sm:$0xff]  ;;  %v493_v1 = vld [vmem:[%s916_s0 + $0x18] sm:$0xff]  ;;  %v29_v2 = vld [vmem:[%s916_s0] sm:$0xff] }
   0x2   :  { %82 = vmatpush.msra.mxu0 %v30_v0  ;;  %159 = vmatpush.msra.mxu1 %v493_v1  ;;  %v492_v3 = vld [vmem:[%s916_s0 + $0x10] sm:$0xff]  ;;  %v17_v4 = vld [vmem:[%s917_s1] sm:$0xff]  ;;  %v18_v5 = vld [vmem:[%s917_s1 + $0x8] sm:$0xff] }
   0x3   :  { %v19_v6 = vld [vmem:[%s917_s1 + $0x10] sm:$0xff]  ;;  %v20_v7 = vld [vmem:[%s917_s1 + $0x18] sm:$0xff]  ;;  %v21_v8 = vld [vmem:[%s917_s1 + $0x20] sm:$0xff] }
   0x4   :  { %83 = vmatpush.msra.mxu0 %v29_v2  ;;  %160 = vmatpush.msra.mxu1 %v492_v3  ;;  %v22_v9 = vld [vmem:[%s917_s1 + $0x28] sm:$0xff]  ;;  %v23_v10 = vld [vmem:[%s917_s1 + $0x30] sm:$0xff]  ;;  %v24_v11 = vld [vmem:[%s917_s1 + $0x38] sm:$0xff] }
   0x5   :  { %480 = vmatmul.msk.f32.vlgmr.msra.gmra.mxu0 %vm31_vm0, %v17_v4  ;;  %494 = vmatmul.msk.f32.vlgmr.msra.gmra.mxu1 %vm31_vm0, %v17_v4  ;;  %v25_v12 = vld [vmem:[%s917_s1 + $0x40] sm:$0xff]  ;;  %v26_v13 = vld [vmem:[%s917_s1 + $0x48] sm:$0xff]  ;;  %v27_v14 = vld [vmem:[%s917_s1 + $0x50] sm:$0xff] }
   0x6   :  { %v28_v15 = vld [vmem:[%s917_s1 + $0x58] sm:$0xff]  ;;  %s547_s1 = smov 64   ;;  %v264_v26 = vld [vmem:[%s918_s2 + $0x170] sm:$0xff]  ;;  %v262_v27 = vld [vmem:[%s918_s2 + $0x160] sm:$0xff] }
   0x7   :  { %538 = vmatpush.msra.mxu3 %v264_v26  ;;  %345 = vmatpush.msrb.mxu1 %v264_v26  ;;  %v260_v28 = vld [vmem:[%s918_s2 + $0x150] sm:$0xff]  ;;  %v258_v29 = vld [vmem:[%s918_s2 + $0x140] sm:$0xff]  ;;  %v249_v44 = vld [vmem:[%s918_s2 + $0xf8] sm:$0xff] }
   0x8   :  { %v256_v32 = vld [vmem:[%s918_s2 + $0x130] sm:$0xff]  ;;  %v254_v33 = vld [vmem:[%s918_s2 + $0x120] sm:$0xff]  ;;  %v247_v46 = vld [vmem:[%s918_s2 + $0xe8] sm:$0xff] }
   0x9   :  { %539 = vmatpush.msra.mxu3 %v262_v27  ;;  %346 = vmatpush.msrb.mxu1 %v262_v27  ;;  %v252_v34 = vld [vmem:[%s918_s2 + $0x110] sm:$0xff]  ;;  %v250_v35 = vld [vmem:[%s918_s2 + $0x100] sm:$0xff]  ;;  %v245_v48 = vld [vmem:[%s918_s2 + $0xd8] sm:$0xff] }
   0xa   :  { %v248_v40 = vld [vmem:[%s918_s2 + $0xf0] sm:$0xff]  ;;  %v246_v41 = vld [vmem:[%s918_s2 + $0xe0] sm:$0xff]  ;;  %v243_v50 = vld [vmem:[%s918_s2 + $0xc8] sm:$0xff] }
   0xb   :  { %540 = vmatpush.msra.mxu3 %v260_v28  ;;  %347 = vmatpush.msrb.mxu1 %v260_v28  ;;  %v244_v43 = vld [vmem:[%s918_s2 + $0xd0] sm:$0xff]  ;;  %v242_v45 = vld [vmem:[%s918_s2 + $0xc0] sm:$0xff]  ;;  %v241_v53 = vld [vmem:[%s918_s2 + $0xb8] sm:$0xff] }
   0xc   :  { %296 = vmatpush.msrb.mxu0 %v248_v40  ;;  %522 = vmatpush.msra.mxu2 %v248_v40  ;;  %v240_v47 = vld [vmem:[%s918_s2 + $0xb0] sm:$0xff]  ;;  %v238_v49 = vld [vmem:[%s918_s2 + $0xa0] sm:$0xff]  ;;  %v239_v55 = vld [vmem:[%s918_s2 + $0xa8] sm:$0xff] }
   0xd   :  { %481 = vmatmul.msk.f32.gmra.mxu0 %vm31_vm0, %v18_v5  ;;  %495 = vmatmul.msk.f32.gmra.mxu1 %vm31_vm0, %v18_v5  ;;  %v236_v52 = vld [vmem:[%s918_s2 + $0x90] sm:$0xff]  ;;  %v234_v54 = vld [vmem:[%s918_s2 + $0x80] sm:$0xff]  ;;  %v237_v57 = vld [vmem:[%s918_s2 + $0x98] sm:$0xff] }
   0xe   :  { %541 = vmatpush.msra.mxu3 %v258_v29  ;;  %348 = vmatpush.msrb.mxu1 %v258_v29  ;;  %v232_v56 = vld [vmem:[%s918_s2 + $0x70] sm:$0xff]  ;;  %v230_v58 = vld [vmem:[%s918_s2 + $0x60] sm:$0xff]  ;;  %v235_v59 = vld [vmem:[%s918_s2 + $0x88] sm:$0xff] }
   0xf   :  { %297 = vmatpush.msrb.mxu0 %v246_v41  ;;  %523 = vmatpush.msra.mxu2 %v246_v41  ;;  %v228_v61 = vld [vmem:[%s918_s2 + $0x50] sm:$0xff]  ;;  %v233_v62 = vld [vmem:[%s918_s2 + $0x78] sm:$0xff]  ;;  %v226_v63 = vld [vmem:[%s918_s2 + $0x40] sm:$0xff] }
  0x10   :  { %542 = vmatpush.msra.mxu3 %v256_v32  ;;  %349 = vmatpush.msrb.mxu1 %v256_v32  ;;  %v231_v0 = vld [vmem:[%s918_s2 + $0x68] sm:$0xff]  ;;  %v224_v1 = vld [vmem:[%s918_s2 + $0x30] sm:$0xff]  ;;  %v229_v2 = vld [vmem:[%s918_s2 + $0x58] sm:$0xff] }
  0x11   :  { %298 = vmatpush.msrb.mxu0 %v244_v43  ;;  %524 = vmatpush.msra.mxu2 %v244_v43  ;;  %v222_v3 = vld [vmem:[%s918_s2 + $0x20] sm:$0xff]  ;;  %v227_v4 = vld [vmem:[%s918_s2 + $0x48] sm:$0xff]  ;;  %v261_v28 = vld [vmem:[%s918_s2 + $0x158] sm:$0xff] }
  0x12   :  { %543 = vmatpush.msra.mxu3 %v254_v33  ;;  %350 = vmatpush.msrb.mxu1 %v254_v33  ;;  %v259_v29 = vld [vmem:[%s918_s2 + $0x148] sm:$0xff]  ;;  %v253_v33 = vld [vmem:[%s918_s2 + $0x118] sm:$0xff] }
  0x13   :  { %299 = vmatpush.msrb.mxu0 %v242_v45  ;;  %525 = vmatpush.msra.mxu2 %v242_v45  ;;  %v255_v32 = vld [vmem:[%s918_s2 + $0x128] sm:$0xff] }
  0x14   :  { %544 = vmatpush.msra.mxu3 %v252_v34  ;;  %351 = vmatpush.msrb.mxu1 %v252_v34 }
  0x15   :  { %482 = vmatmul.msk.f32.gmra.mxu0 %vm31_vm0, %v19_v6  ;;  %496 = vmatmul.msk.f32.gmra.mxu1 %vm31_vm0, %v19_v6 }
  0x16   :  { %545 = vmatpush.msra.mxu3 %v250_v35  ;;  %352 = vmatpush.msrb.mxu1 %v250_v35 }
  0x17   :  { %300 = vmatpush.msrb.mxu0 %v240_v47  ;;  %526 = vmatpush.msra.mxu2 %v240_v47 }
  0x18   :  { %378 = vmatpush.msrb.mxu3 %v249_v44 }
  0x19   :  { %301 = vmatpush.msrb.mxu0 %v238_v49  ;;  %527 = vmatpush.msra.mxu2 %v238_v49 }
  0x1a   :  { %379 = vmatpush.msrb.mxu3 %v247_v46 }
  0x1b   :  { %302 = vmatpush.msrb.mxu0 %v236_v52  ;;  %528 = vmatpush.msra.mxu2 %v236_v52 }
  0x1c   :  { %380 = vmatpush.msrb.mxu3 %v245_v48 }
  0x1d   :  { %483 = vmatmul.msk.f32.gmra.mxu0 %vm31_vm0, %v20_v7  ;;  %497 = vmatmul.msk.f32.gmra.mxu1 %vm31_vm0, %v20_v7  ;;  %v220_v7 = vld [vmem:[%s918_s2 + $0x10] sm:$0xff] }
  0x1e   :  { %381 = vmatpush.msrb.mxu3 %v243_v50  ;;  %303 = vmatpush.msrb.mxu0 %v234_v54 }
  0x1f   :  { %529 = vmatpush.msra.mxu2 %v234_v54 }
  0x20   :  { %382 = vmatpush.msrb.mxu3 %v241_v53  ;;  %304 = vmatpush.msrb.mxu0 %v232_v56 }
  0x21   :  { %530 = vmatpush.msra.mxu2 %v232_v56 }
  0x22   :  { %383 = vmatpush.msrb.mxu3 %v239_v55  ;;  %305 = vmatpush.msrb.mxu0 %v230_v58 }
  0x23   :  { %531 = vmatpush.msra.mxu2 %v230_v58 }
  0x24   :  { %384 = vmatpush.msrb.mxu3 %v237_v57  ;;  %306 = vmatpush.msrb.mxu0 %v228_v61 }
  0x25   :  { %484 = vmatmul.msk.f32.gmra.mxu0 %vm31_vm0, %v21_v8  ;;  %498 = vmatmul.msk.f32.gmra.mxu1 %vm31_vm0, %v21_v8  ;;  %v225_v8 = vld [vmem:[%s918_s2 + $0x38] sm:$0xff] }
  0x26   :  { %385 = vmatpush.msrb.mxu3 %v235_v59  ;;  %532 = vmatpush.msra.mxu2 %v228_v61 }
  0x27   :  { %307 = vmatpush.msrb.mxu0 %v226_v63 }
  0x28   :  { %386 = vmatpush.msrb.mxu3 %v233_v62  ;;  %533 = vmatpush.msra.mxu2 %v226_v63 }
  0x29   :  { %308 = vmatpush.msrb.mxu0 %v224_v1 }
  0x2a   :  { %387 = vmatpush.msrb.mxu3 %v231_v0  ;;  %534 = vmatpush.msra.mxu2 %v224_v1 }
  0x2b   :  { %309 = vmatpush.msrb.mxu0 %v222_v3 }
  0x2c   :  { %388 = vmatpush.msrb.mxu3 %v229_v2  ;;  %535 = vmatpush.msra.mxu2 %v222_v3 }
  0x2d   :  { %485 = vmatmul.msk.f32.gmra.mxu0 %vm31_vm0, %v22_v9  ;;  %499 = vmatmul.msk.f32.gmra.mxu1 %vm31_vm0, %v22_v9  ;;  %v218_v9 = vld [vmem:[%s918_s2] sm:$0xff] }
  0x2e   :  { %389 = vmatpush.msrb.mxu3 %v227_v4  ;;  %310 = vmatpush.msrb.mxu0 %v220_v7 }
  0x2f   :  { %536 = vmatpush.msra.mxu2 %v220_v7 }
  0x30   :  { %390 = vmatpush.msrb.mxu3 %v225_v8  ;;  %311 = vmatpush.msrb.mxu0 %v218_v9 }
  0x31   :  { %537 = vmatpush.msra.mxu2 %v218_v9 }
  0x35   :  { %486 = vmatmul.msk.f32.gmra.mxu0 %vm31_vm0, %v23_v10  ;;  %500 = vmatmul.msk.f32.gmra.mxu1 %vm31_vm0, %v23_v10  ;;  %v223_v10 = vld [vmem:[%s918_s2 + $0x28] sm:$0xff] }
  0x36   :  { %391 = vmatpush.msrb.mxu3 %v223_v10 }
  0x3d   :  { %487 = vmatmul.msk.f32.gmra.mxu0 %vm31_vm0, %v24_v11  ;;  %501 = vmatmul.msk.f32.gmra.mxu1 %vm31_vm0, %v24_v11  ;;  %v221_v11 = vld [vmem:[%s918_s2 + $0x18] sm:$0xff] }
  0x3e   :  { %392 = vmatpush.msrb.mxu3 %v221_v11 }
  0x45   :  { %488 = vmatmul.msk.f32.gmra.mxu0 %vm31_vm0, %v25_v12  ;;  %502 = vmatmul.msk.f32.gmra.mxu1 %vm31_vm0, %v25_v12  ;;  %v219_v12 = vld [vmem:[%s918_s2 + $0x8] sm:$0xff] }
  0x46   :  { %393 = vmatpush.msrb.mxu3 %v219_v12 }
  0x4d   :  { %489 = vmatmul.msk.f32.gmra.mxu0 %vm31_vm0, %v26_v13  ;;  %503 = vmatmul.msk.f32.gmra.mxu1 %vm31_vm0, %v26_v13 }
  0x55   :  { %490 = vmatmul.msk.f32.gmra.mxu0 %vm31_vm0, %v27_v14  ;;  %504 = vmatmul.msk.f32.gmra.mxu1 %vm31_vm0, %v27_v14 }
  0x5d   :  { %491 = vmatmul.msk.f32.gmra.mxu0 %vm31_vm0, %v28_v15  ;;  %505 = vmatmul.msk.f32.gmra.mxu1 %vm31_vm0, %v28_v15  ;;  %v265_v15 = vld [vmem:[%s918_s2 + $0x178] sm:$0xff] }
  0x5e   :  { %427 = vmatpush.msrb.mxu2 %v265_v15 }
  0x82   :  { %v645_v16 = vpop.f32.mrf.mxu0  ;;  %v647_v17 = vpop.f32.mrf.mxu1 }
  0x8a   :  { %v649_v18 = vpop.f32.mrf.mxu0  ;;  %v651_v19 = vpop.f32.mrf.mxu1 }
  0x92   :  { %v653_v20 = vpop.f32.mrf.mxu0  ;;  %v655_v21 = vpop.f32.mrf.mxu1 }
  0x9a   :  { %v657_v22 = vpop.f32.mrf.mxu0  ;;  %v659_v23 = vpop.f32.mrf.mxu1 }
  0xa2   :  { %v97_v24 = vpop.f32.mrf.mxu0  ;;  %v174_v25 = vpop.f32.mrf.mxu1 }
  0xa3   :  { %202 = vrot.lane.b32.xlu0 %v174_v25, %s547_s1  ;;  %125 = vrot.lane.b32.xlu2 %v97_v24, %s547_s1  ;;  %v263_v24 = vld [vmem:[%s918_s2 + $0x168] sm:$0xff] }
  0xa4   :  { %428 = vmatpush.msrb.mxu2 %v263_v24 }
  0xa6   :  { %429 = vmatpush.msrb.mxu2 %v261_v28 }
  0xa8   :  { %430 = vmatpush.msrb.mxu2 %v259_v29 }
  0xaa   :  { %v100_v30 = vpop.f32.mrf.mxu0  ;;  %v177_v31 = vpop.f32.mrf.mxu1 }
  0xab   :  { %204 = vrot.lane.b32.xlu0 %v177_v31, %s547_s1  ;;  %127 = vrot.lane.b32.xlu2 %v100_v30, %s547_s1 }
  0xb2   :  { %v103_v36 = vpop.f32.mrf.mxu0  ;;  %v180_v37 = vpop.f32.mrf.mxu1 }
  0xb3   :  { %206 = vrot.lane.b32.xlu1 %v180_v37, %s547_s1  ;;  %129 = vrot.lane.b32.xlu0 %v103_v36, %s547_s1 }
  0xba   :  { %v106_v38 = vpop.f32.mrf.mxu0  ;;  %v183_v39 = vpop.f32.mrf.mxu1 }
  0xbb   :  { %208 = vrot.lane.b32.xlu1 %v183_v39, %s547_s1 }
  0xc2   :  { %v698_v42 = vpop.f32.mrf.mxu0  ;;  %v785_v6 = vpop.f32.mrf.mxu1 }
  0xc3   :  { %131 = vrot.lane.b32.xlu1 %v106_v38, %s547_s1  ;;  %506 = vmatmul.msk.f32.vlgmr.msrb.gmra.mxu1 %vm137_vm1, %v698_v42 }
  0xca   :  { %v727_v51 = vpop.f32.mrf.mxu0  ;;  %v189_v13 = vpop.f32.mrf.mxu1 }
  0xcb   :  { %507 = vmatmul.msk.f32.gmra.mxu1 %vm137_vm1, %v727_v51 }
  0xd2   :  { %v755_v60 = vpop.f32.mrf.mxu0  ;;  %v192_v14 = vpop.f32.mrf.mxu1 }
  0xd3   :  { %508 = vmatmul.msk.f32.vlgmr.msra.gmra.mxu3 %vm137_vm1, %v755_v60 }
  0xda   :  { %v783_v5 = vpop.f32.mrf.mxu0  ;;  %v195_v25 = vpop.f32.mrf.mxu1 }
  0xdb   :  { %509 = vmatmul.msk.f32.gmra.mxu3 %vm137_vm1, %v783_v5 }
  0xe3   :  { %510 = vmatmul.msk.f32.gmra.mxu3 %vm137_vm1, %v785_v6 }
  0xeb   :  { %511 = vmatmul.msk.f32.gmra.mxu3 %vm137_vm1, %v189_v13 }
  0xf3   :  { %512 = vmatmul.msk.f32.gmra.mxu3 %vm137_vm1, %v192_v14 }
  0xfb   :  { %513 = vmatmul.msk.f32.gmra.mxu3 %vm137_vm1, %v195_v25 }
  0xfd   :  { %v126_v26 = vpop.permute.xlu2 %125 }
  0xfe   :  { %v138_v27 = vsel %vm137_vm1, %v645_v16, %v126_v26  ;;  %v257_v16 = vld [vmem:[%s918_s2 + $0x138] sm:$0xff] }
  0xff   :  { %312 = vmatmul.f32.vlgmr.msrb.gmra.mxu0 %v138_v27  ;;  %431 = vmatpush.msrb.mxu2 %v257_v16 }
 0x101   :  { %432 = vmatpush.msrb.mxu2 %v255_v32 }
 0x103   :  { %394 = vmatmul.f32.vlgmr.msrb.gmra.mxu3 %v138_v27  ;;  %433 = vmatpush.msrb.mxu2 %v253_v33 }
 0x105   :  { %v128_v30 = vpop.permute.xlu2 %127 }
 0x106   :  { %v139_v31 = vsel %vm137_vm1, %v649_v18, %v128_v30  ;;  %v251_v18 = vld [vmem:[%s918_s2 + $0x108] sm:$0xff] }
 0x107   :  { %315 = vmatmul.f32.gmra.mxu0 %v139_v31  ;;  %434 = vmatpush.msrb.mxu2 %v251_v18 }
 0x10b   :  { %397 = vmatmul.f32.gmra.mxu3 %v139_v31 }
 0x115   :  { %v203_v34 = vpop.permute.xlu0 %202 }
 0x116   :  { %v214_v35 = vsel %vm137_vm1, %v647_v17, %v203_v34 }
 0x117   :  { %324 = vmatmul.f32.vlgmr.msra.gmra.mxu2 %v214_v35 }
 0x11d   :  { %v205_v36 = vpop.permute.xlu0 %204 }
 0x11e   :  { %v215_v37 = vsel %vm137_vm1, %v651_v19, %v205_v36 }
 0x11f   :  { %327 = vmatmul.f32.gmra.mxu2 %v215_v37 }
 0x125   :  { %v207_v38 = vpop.permute.xlu1 %206  ;;  %v130_v39 = vpop.permute.xlu0 %129 }
 0x126   :  { %v140_v40 = vsel %vm137_vm1, %v653_v20, %v130_v39  ;;  %v216_v41 = vsel %vm137_vm1, %v655_v21, %v207_v38  ;;  %v266_v21 = vld [vmem:[%s919_s3] sm:$0x3] }
 0x127   :  { %318 = vmatmul.f32.gmra.mxu0 %v140_v40  ;;  %330 = vmatmul.f32.gmra.mxu2 %v216_v41  ;;  %v269_v10 = vperm.slane %v266_v21, 1 }
 0x128   :  { %400 = vmatmul.f32.gmra.mxu3 %v140_v40 }
 0x12d   :  { %v209_v43 = vpop.permute.xlu1 %208 }
 0x12e   :  { %v217_v17 = vsel %vm137_vm1, %v659_v23, %v209_v43 }
 0x12f   :  { %333 = vmatmul.f32.gmra.mxu2 %v217_v17 }
 0x135   :  { %v132_v44 = vpop.permute.xlu1 %131 }
 0x136   :  { %v141_v19 = vsel %vm137_vm1, %v657_v22, %v132_v44  ;;  %v268_v22 = vperm.slane %v266_v21, 0 }
 0x137   :  { %321 = vmatmul.f32.gmra.mxu0 %v141_v19  ;;  %403 = vmatmul.f32.gmra.mxu3 %v141_v19 }
 0x138   :  { %514 = vmatmul.msk.f32.vlgmr.msrb.gmra.mxu2 %vm137_vm1, %v698_v42 }
 0x13f   :  { %406 = vmatmul.f32.gmra.mxu3 %v214_v35 }
 0x140   :  { %515 = vmatmul.msk.f32.gmra.mxu2 %vm137_vm1, %v727_v51  ;;  %v354_v42 = vpop.f32.mrf.mxu1 }
 0x147   :  { %409 = vmatmul.f32.gmra.mxu3 %v215_v37 }
 0x148   :  { %516 = vmatmul.msk.f32.gmra.mxu2 %vm137_vm1, %v755_v60  ;;  %v357_v51 = vpop.f32.mrf.mxu1 }
 0x14f   :  { %412 = vmatmul.f32.gmra.mxu3 %v216_v41 }
 0x150   :  { %517 = vmatmul.msk.f32.gmra.mxu2 %vm137_vm1, %v783_v5 }
 0x156   :  { %v360_v20 = vpop.f32.mrf.mxu3 }
 0x157   :  { %415 = vmatmul.f32.gmra.mxu3 %v217_v17 }
 0x158   :  { %518 = vmatmul.msk.f32.gmra.mxu2 %vm137_vm1, %v785_v6 }
 0x15e   :  { %v363_v23 = vpop.f32.mrf.mxu3 }
 0x160   :  { %519 = vmatmul.msk.f32.gmra.mxu2 %vm137_vm1, %v189_v13 }
 0x166   :  { %v366_v49 = vpop.f32.mrf.mxu3 }
 0x168   :  { %520 = vmatmul.msk.f32.gmra.mxu2 %vm137_vm1, %v192_v14 }
 0x16e   :  { %v369_v53 = vpop.f32.mrf.mxu3 }
 0x170   :  { %521 = vmatmul.msk.f32.gmra.mxu2 %vm137_vm1, %v195_v25 }
 0x176   :  { %v372_v54 = vpop.f32.mrf.mxu3 }
 0x17c   :  { %v313_v45 = vpop.f32.mrf.mxu0 }
 0x17d   :  { %v314_v46 = vadd.f32 %v313_v45, %v268_v22 }
 0x17e   :  { %v375_v59 = vpop.f32.mrf.mxu3 }
 0x17f   :  { %v355_v47 = vadd.f32 %v354_v42, %v314_v46 }
 0x181   :  { %460 = vst [vmem:[%s920_s4] sm:$0xff] %v355_v47 }
 0x184   :  { %v316_v48 = vpop.f32.mrf.mxu0 }
 0x185   :  { %v317_v50 = vadd.f32 %v316_v48, %v268_v22 }
 0x186   :  { %v395_v3 = vpop.f32.mrf.mxu3 }
 0x187   :  { %v358_v52 = vadd.f32 %v357_v51, %v317_v50  ;;  %v396_v13 = vadd.f32 %v395_v3, %v269_v10 }
 0x189   :  { %462 = vst [vmem:[%s920_s4 + $0x10] sm:$0xff] %v358_v52 }
 0x18e   :  { %v398_v11 = vpop.f32.mrf.mxu3 }
 0x18f   :  { %v399_v25 = vadd.f32 %v398_v11, %v269_v10 }
 0x19a   :  { %v325_v55 = vpop.f32.mrf.mxu2 }
 0x19b   :  { %v326_v56 = vadd.f32 %v325_v55, %v268_v22 }
 0x19d   :  { %v367_v57 = vadd.f32 %v366_v49, %v326_v56 }
 0x19f   :  { %468 = vst [vmem:[%s920_s4 + $0x40] sm:$0xff] %v367_v57 }
 0x1a2   :  { %v328_v58 = vpop.f32.mrf.mxu2 }
 0x1a3   :  { %v329_v60 = vadd.f32 %v328_v58, %v268_v22 }
 0x1a4   :  { %v319_v61 = vpop.f32.mrf.mxu0 }
 0x1a5   :  { %v370_v62 = vadd.f32 %v369_v53, %v329_v60  ;;  %v320_v63 = vadd.f32 %v319_v61, %v268_v22 }
 0x1a7   :  { %470 = vst [vmem:[%s920_s4 + $0x50] sm:$0xff] %v370_v62  ;;  %v361_v0 = vadd.f32 %v360_v20, %v320_v63 }
 0x1a9   :  { %464 = vst [vmem:[%s920_s4 + $0x20] sm:$0xff] %v361_v0 }
 0x1aa   :  { %v331_v1 = vpop.f32.mrf.mxu2 }
 0x1ab   :  { %v332_v2 = vadd.f32 %v331_v1, %v268_v22  ;;  %v401_v24 = vpop.f32.mrf.mxu3 }
 0x1ac   :  { %v402_v29 = vadd.f32 %v401_v24, %v269_v10 }
 0x1ad   :  { %v373_v4 = vadd.f32 %v372_v54, %v332_v2 }
 0x1af   :  { %472 = vst [vmem:[%s920_s4 + $0x60] sm:$0xff] %v373_v4 }
 0x1b2   :  { %v334_v5 = vpop.f32.mrf.mxu2 }
 0x1b3   :  { %v335_v6 = vadd.f32 %v334_v5, %v268_v22 }
 0x1b4   :  { %v322_v7 = vpop.f32.mrf.mxu0 }
 0x1b5   :  { %v376_v8 = vadd.f32 %v375_v59, %v335_v6  ;;  %v323_v9 = vadd.f32 %v322_v7, %v268_v22 }
 0x1b7   :  { %474 = vst [vmem:[%s920_s4 + $0x70] sm:$0xff] %v376_v8  ;;  %v364_v12 = vadd.f32 %v363_v23, %v323_v9 }
 0x1b9   :  { %466 = vst [vmem:[%s920_s4 + $0x30] sm:$0xff] %v364_v12 }
 0x1ba   :  { %v404_v28 = vpop.f32.mrf.mxu3 }
 0x1bb   :  { %v436_v14 = vpop.f32.mrf.mxu2  ;;  %v405_v32 = vadd.f32 %v404_v28, %v269_v10 }
 0x1bc   :  { %v437_v15 = vadd.f32 %v436_v14, %v396_v13 }
 0x1be   :  { %461 = vst [vmem:[%s920_s4 + $0x8] sm:$0xff] %v437_v15 }
 0x1c2   :  { %v407_v16 = vpop.f32.mrf.mxu3 }
 0x1c3   :  { %v439_v26 = vpop.f32.mrf.mxu2  ;;  %v408_v34 = vadd.f32 %v407_v16, %v269_v10 }
 0x1c4   :  { %v440_v27 = vadd.f32 %v439_v26, %v399_v25 }
 0x1c6   :  { %463 = vst [vmem:[%s920_s4 + $0x18] sm:$0xff] %v440_v27 }
 0x1ca   :  { %v410_v35 = vpop.f32.mrf.mxu3 }
 0x1cb   :  { %v442_v30 = vpop.f32.mrf.mxu2  ;;  %v411_v38 = vadd.f32 %v410_v35, %v269_v10 }
 0x1cc   :  { %v443_v31 = vadd.f32 %v442_v30, %v402_v29 }
 0x1ce   :  { %465 = vst [vmem:[%s920_s4 + $0x28] sm:$0xff] %v443_v31 }
 0x1d2   :  { %v413_v41 = vpop.f32.mrf.mxu3 }
 0x1d3   :  { %v445_v33 = vpop.f32.mrf.mxu2  ;;  %v414_v43 = vadd.f32 %v413_v41, %v269_v10 }
 0x1d4   :  { %v446_v18 = vadd.f32 %v445_v33, %v405_v32 }
 0x1d6   :  { %467 = vst [vmem:[%s920_s4 + $0x38] sm:$0xff] %v446_v18 }
 0x1da   :  { %v416_v19 = vpop.f32.mrf.mxu3 }
 0x1db   :  { %v448_v36 = vpop.f32.mrf.mxu2  ;;  %v417_v20 = vadd.f32 %v416_v19, %v269_v10 }
 0x1dc   :  { %v449_v37 = vadd.f32 %v448_v36, %v408_v34 }
 0x1de   :  { %469 = vst [vmem:[%s920_s4 + $0x48] sm:$0xff] %v449_v37 }
 0x1e3   :  { %v451_v39 = vpop.f32.mrf.mxu2 }
 0x1e4   :  { %v452_v40 = vadd.f32 %v451_v39, %v411_v38 }
 0x1e6   :  { %471 = vst [vmem:[%s920_s4 + $0x58] sm:$0xff] %v452_v40 }
 0x1eb   :  { %v454_v17 = vpop.f32.mrf.mxu2 }
 0x1ec   :  { %v455_v44 = vadd.f32 %v454_v17, %v414_v43 }
 0x1ee   :  { %473 = vst [vmem:[%s920_s4 + $0x68] sm:$0xff] %v455_v44 }
 0x1f3   :  { %v457_v21 = vpop.f32.mrf.mxu2 }
 0x1f4   :  { %v458_v22 = vadd.f32 %v457_v21, %v417_v20 }
 0x1f6   :  { %475 = vst [vmem:[%s920_s4 + $0x78] sm:$0xff] %v458_v22 }

</bundles_post_ra>
